<compile_context>
chip_gen: v5e
topology: v5e:2x2
jax: 0.10.0
libtpu: 0.0.40
codegen_flags: <defaults>
</compile_context>

<pallas_src>
import jax
import jax.numpy as jnp
from jax.experimental import pallas as pl
from jax.experimental.pallas import tpu as pltpu


def actor_net_kernel(x_ref, w1_ref, b1_ref, w2_ref, b2_ref, w3_ref, b3_ref, o_ref):
    # fc1 + ReLU (f32 operands, f32 MXU accumulation)
    h1 = jnp.dot(x_ref[...], w1_ref[...], preferred_element_type=jnp.float32)
    h1 = jnp.maximum(h1 + b1_ref[...], 0.0)
    # fc2 + ReLU
    h2 = jnp.dot(h1, w2_ref[...], preferred_element_type=jnp.float32)
    h2 = jnp.maximum(h2 + b2_ref[...], 0.0)
    # fc3
    logits = jnp.dot(h2, w3_ref[...], preferred_element_type=jnp.float32)
    logits = logits + b3_ref[...]
    # numerically-stable softmax over the action axis (PyTorch dim=1)
    m = jnp.max(logits, axis=-1, keepdims=True)
    e = jnp.exp(logits - m)
    denom = jnp.sum(e, axis=-1, keepdims=True)
    # exact reciprocal keeps sum-to-1 tight; approx=True would use the idle EUP slot
    o_ref[...] = (e * pl.reciprocal(denom, approx=False)).astype(o_ref.dtype)


# Review: 4096-8192 rows per tile amortizes the ~0.35 µs/step grid overhead; 4096 keeps
# the lane-padded (TM, 128) f32 intermediates ~2 MiB each so the kernel fits the 32 MiB
# scoped-VMEM budget on every generation (including v7x's 64 MiB physical VMEM).
_DEFAULT_BLOCK_M = 4096


def _choose_block_m(batch, block_m):
    if block_m is None:
        block_m = _DEFAULT_BLOCK_M
    if batch <= block_m:
        return batch                      # single full-batch block (always a legal shape)
    return max(8, (block_m // 8) * 8)     # tiled: keep the sublane (8) divisibility


def actor_net_forward(x, params, *, block_m=None, core_parallel=False):
    """x: (batch, state_dim) f32. params: dict of weights/biases (see init_params).
    Returns (batch, action_dim) f32 action probabilities (softmax over dim=1).

    core_parallel=True selects pltpu.CORE_PARALLEL on the batch grid axis so the two
    TensorCores of a v7x chip each take half the batch tiles (leave False on 1-TC chips).
    """
    w1, b1, w2, b2, w3, b3 = (
        params["w1"], params["b1"], params["w2"],
        params["b2"], params["w3"], params["b3"],
    )
    batch, state_dim = x.shape
    hidden = w1.shape[1]
    action_dim = w3.shape[1]

    tm = _choose_block_m(batch, block_m)
    grid = (pl.cdiv(batch, tm),)

    def resident(shape):
        # Same block index at every grid step -> weights/biases stay VMEM-resident
        # across the whole batch loop (loaded once, no re-DMA).
        return pl.BlockSpec(shape, lambda i: (0, 0))

    flops = 2 * batch * (state_dim * hidden + hidden * hidden + hidden * action_dim)
    param_bytes = sum(a.nbytes for a in (w1, b1, w2, b2, w3, b3))
    bytes_accessed = x.nbytes + param_bytes + batch * action_dim * 4
    cost = pl.CostEstimate(
        flops=flops,
        transcendentals=batch * action_dim,   # exp in the softmax
        bytes_accessed=bytes_accessed,
    )

    # Only evaluate pltpu.CORE_PARALLEL when explicitly requested (v7x).
    dim_sem = (pltpu.CORE_PARALLEL,) if core_parallel else ("parallel",)

    return pl.pallas_call(
        actor_net_kernel,
        out_shape=jax.ShapeDtypeStruct((batch, action_dim), jnp.float32),
        grid=grid,
        in_specs=[
            pl.BlockSpec((tm, state_dim), lambda i: (i, 0)),   # x: tiled along batch
            resident((state_dim, hidden)),                     # w1
            resident((1, hidden)),                             # b1
            resident((hidden, hidden)),                        # w2
            resident((1, hidden)),                             # b2
            resident((hidden, action_dim)),                    # w3
            resident((1, action_dim)),                         # b3
        ],
        out_specs=pl.BlockSpec((tm, action_dim), lambda i: (i, 0)),
        compiler_params=pltpu.CompilerParams(
            dimension_semantics=dim_sem,
            vmem_limit_bytes=32 * 1024 * 1024,
        ),
        cost_estimate=cost,
    )(x, w1, b1, w2, b2, w3, b3)


def init_params(key, state_dim, action_dim, hidden=40):
    """Deterministic init mimicking PyTorch Linear's U(-1/sqrt(fan_in), 1/sqrt(fan_in)).
    Weights stored as (in_features, out_features); biases as (1, out_features)."""
    ks = jax.random.split(key, 6)

    def linear(kw, kb, fan_in, fan_out):
        bound = 1.0 / jnp.sqrt(jnp.float32(fan_in))
        w = jax.random.uniform(kw, (fan_in, fan_out), jnp.float32, -bound, bound)
        b = jax.random.uniform(kb, (1, fan_out), jnp.float32, -bound, bound)
        return w, b

    w1, b1 = linear(ks[0], ks[1], state_dim, hidden)
    w2, b2 = linear(ks[2], ks[3], hidden, hidden)
    w3, b3 = linear(ks[4], ks[5], hidden, action_dim)
    return {"w1": w1, "b1": b1, "w2": w2, "b2": b2, "w3": w3, "b3": b3}


def _reference_f32(x, p):
    """Pure-JAX f32 reference matching the PyTorch module (HIGHEST precision matmuls)."""
    hp = jax.lax.Precision.HIGHEST
    h1 = jax.nn.relu(jnp.dot(x, p["w1"], precision=hp) + p["b1"])
    h2 = jax.nn.relu(jnp.dot(h1, p["w2"], precision=hp) + p["b2"])
    return jax.nn.softmax(jnp.dot(h2, p["w3"], precision=hp) + p["b3"], axis=1)


if __name__ == "__main__":
    key = jax.random.PRNGKey(0)
    k_x, k_p, k_x2 = jax.random.split(key, 3)

    state_dim, action_dim = 16, 8
    params = init_params(k_p, state_dim, action_dim)

    # Canonical small case (batch=2): single full-batch block.
    x = jax.random.normal(k_x, (2, state_dim), jnp.float32)
    out = jax.block_until_ready(actor_net_forward(x, params))
    assert out.shape == (2, action_dim)
    assert jnp.allclose(jnp.sum(out, axis=1), 1.0, atol=1e-5)
    assert jnp.allclose(out, _reference_f32(x, params), atol=1e-4)

    # Multi-step grid with a partial last block (batch=136, 64-row tiles: 64+64+8),
    # exercising the batch % TM != 0 path flagged in the review.
    x2 = jax.random.normal(k_x2, (136, state_dim), jnp.float32)
    out2 = jax.block_until_ready(actor_net_forward(x2, params, block_m=64))
    assert out2.shape == (136, action_dim)
    assert jnp.allclose(jnp.sum(out2, axis=1), 1.0, atol=1e-5)
    assert jnp.allclose(out2, _reference_f32(x2, params), atol=1e-4)

    print("KERNEL_OK")
</pallas_src>

<mosaic_0001>
module attributes {stable_mosaic.version = 11 : i64} {
  func.func @actor_net_kernel(%arg0: i32, %arg1: memref<2x16xf32, #tpu.memory_space<vmem>>, %arg2: memref<16x40xf32, #tpu.memory_space<vmem>>, %arg3: memref<1x40xf32, #tpu.memory_space<vmem>>, %arg4: memref<40x40xf32, #tpu.memory_space<vmem>>, %arg5: memref<1x40xf32, #tpu.memory_space<vmem>>, %arg6: memref<40x8xf32, #tpu.memory_space<vmem>>, %arg7: memref<1x8xf32, #tpu.memory_space<vmem>>, %arg8: memref<2x8xf32, #tpu.memory_space<vmem>>) attributes {dimension_semantics = [#tpu.dimension_semantics<parallel>], iteration_bounds = array<i64: 1>, scalar_prefetch = 0 : i64, scratch_operands = 0 : i64, tpu.core_type = #tpu.core_type<tc>, window_params = [{transform_indices = @transform_0, window_bounds = array<i64: 2, 16>}, {pipeline_mode = #tpu.pipeline_mode<synchronous>, transform_indices = @transform_1, window_bounds = array<i64: 16, 40>}, {pipeline_mode = #tpu.pipeline_mode<synchronous>, transform_indices = @transform_2, window_bounds = array<i64: 1, 40>}, {pipeline_mode = #tpu.pipeline_mode<synchronous>, transform_indices = @transform_3, window_bounds = array<i64: 40, 40>}, {pipeline_mode = #tpu.pipeline_mode<synchronous>, transform_indices = @transform_4, window_bounds = array<i64: 1, 40>}, {pipeline_mode = #tpu.pipeline_mode<synchronous>, transform_indices = @transform_5, window_bounds = array<i64: 40, 8>}, {pipeline_mode = #tpu.pipeline_mode<synchronous>, transform_indices = @transform_6, window_bounds = array<i64: 1, 8>}, {transform_indices = @transform_7, window_bounds = array<i64: 2, 8>}]} {
    %c0 = arith.constant 0 : index
    %c0_0 = arith.constant 0 : index
    %0 = vector.load %arg1[%c0, %c0_0] : memref<2x16xf32, #tpu.memory_space<vmem>>, vector<2x16xf32>
    %c0_1 = arith.constant 0 : index
    %c0_2 = arith.constant 0 : index
    %1 = vector.load %arg2[%c0_1, %c0_2] : memref<16x40xf32, #tpu.memory_space<vmem>>, vector<16x40xf32>
    %cst = arith.constant dense<0.000000e+00> : vector<2x40xf32>
    %2 = tpu.matmul %0, %1, %cst {dimension_numbers = #tpu.dot_dimension_numbers<[1], [0], [0], [1], [0, 0, 1, 1], [], []>} : vector<2x16xf32>, vector<16x40xf32>, vector<2x40xf32> -> vector<2x40xf32>
    %c0_3 = arith.constant 0 : index
    %c0_4 = arith.constant 0 : index
    %3 = vector.load %arg3[%c0_3, %c0_4] : memref<1x40xf32, #tpu.memory_space<vmem>>, vector<1x40xf32>
    %4 = vector.broadcast %3 : vector<1x40xf32> to vector<2x40xf32>
    %5 = arith.addf %2, %4 : vector<2x40xf32>
    %cst_5 = arith.constant 0.000000e+00 : f32
    %6 = vector.broadcast %cst_5 : f32 to vector<2x40xf32>
    %7 = arith.maximumf %5, %6 : vector<2x40xf32>
    %c0_6 = arith.constant 0 : index
    %c0_7 = arith.constant 0 : index
    %8 = vector.load %arg4[%c0_6, %c0_7] : memref<40x40xf32, #tpu.memory_space<vmem>>, vector<40x40xf32>
    %cst_8 = arith.constant dense<0.000000e+00> : vector<2x40xf32>
    %9 = tpu.matmul %7, %8, %cst_8 {dimension_numbers = #tpu.dot_dimension_numbers<[1], [0], [0], [1], [0, 0, 1, 1], [], []>} : vector<2x40xf32>, vector<40x40xf32>, vector<2x40xf32> -> vector<2x40xf32>
    %c0_9 = arith.constant 0 : index
    %c0_10 = arith.constant 0 : index
    %10 = vector.load %arg5[%c0_9, %c0_10] : memref<1x40xf32, #tpu.memory_space<vmem>>, vector<1x40xf32>
    %11 = vector.broadcast %10 : vector<1x40xf32> to vector<2x40xf32>
    %12 = arith.addf %9, %11 : vector<2x40xf32>
    %cst_11 = arith.constant 0.000000e+00 : f32
    %13 = vector.broadcast %cst_11 : f32 to vector<2x40xf32>
    %14 = arith.maximumf %12, %13 : vector<2x40xf32>
    %c0_12 = arith.constant 0 : index
    %c0_13 = arith.constant 0 : index
    %15 = vector.load %arg6[%c0_12, %c0_13] : memref<40x8xf32, #tpu.memory_space<vmem>>, vector<40x8xf32>
    %cst_14 = arith.constant dense<0.000000e+00> : vector<2x8xf32>
    %16 = tpu.matmul %14, %15, %cst_14 {dimension_numbers = #tpu.dot_dimension_numbers<[1], [0], [0], [1], [0, 0, 1, 1], [], []>} : vector<2x40xf32>, vector<40x8xf32>, vector<2x8xf32> -> vector<2x8xf32>
    %c0_15 = arith.constant 0 : index
    %c0_16 = arith.constant 0 : index
    %17 = vector.load %arg7[%c0_15, %c0_16] : memref<1x8xf32, #tpu.memory_space<vmem>>, vector<1x8xf32>
    %18 = vector.broadcast %17 : vector<1x8xf32> to vector<2x8xf32>
    %19 = arith.addf %16, %18 : vector<2x8xf32>
    %cst_17 = arith.constant dense<0xFF800000> : vector<2xf32>
    %20 = vector.multi_reduction <maximumf>, %19, %cst_17 [1] : vector<2x8xf32> to vector<2xf32>
    %21 = vector.shape_cast %20 : vector<2xf32> to vector<2x1xf32>
    %22 = vector.broadcast %21 : vector<2x1xf32> to vector<2x8xf32>
    %23 = arith.subf %19, %22 : vector<2x8xf32>
    %24 = math.exp %23 : vector<2x8xf32>
    %cst_18 = arith.constant dense<0.000000e+00> : vector<2xf32>
    %25 = vector.multi_reduction <add>, %24, %cst_18 [1] : vector<2x8xf32> to vector<2xf32>
    %26 = vector.shape_cast %25 : vector<2xf32> to vector<2x1xf32>
    %27 = tpu.reciprocal %26 : vector<2x1xf32> -> vector<2x1xf32>
    %28 = vector.broadcast %27 : vector<2x1xf32> to vector<2x8xf32>
    %29 = arith.mulf %24, %28 : vector<2x8xf32>
    %c0_19 = arith.constant 0 : index
    %c0_20 = arith.constant 0 : index
    %30 = vector.load %arg8[%c0_19, %c0_20] : memref<2x8xf32, #tpu.memory_space<vmem>>, vector<2x8xf32>
    tpu.vector_store %arg8[%c0_19, %c0_20], %29 {strides = array<i32>} : memref<2x8xf32, #tpu.memory_space<vmem>>, vector<2x8xf32>,
    return
  }
  func.func @transform_0(%arg0: i32) -> (i32, i32) {
    %c0_i32 = arith.constant 0 : i32
    %c0_i32_0 = arith.constant 0 : i32
    return %arg0, %c0_i32 : i32, i32
  }
  func.func @transform_1(%arg0: i32) -> (i32, i32) {
    %c0_i32 = arith.constant 0 : i32
    %c0_i32_0 = arith.constant 0 : i32
    %c0_i32_1 = arith.constant 0 : i32
    return %c0_i32, %c0_i32_0 : i32, i32
  }
  func.func @transform_2(%arg0: i32) -> (i32, i32) {
    %c0_i32 = arith.constant 0 : i32
    %c0_i32_0 = arith.constant 0 : i32
    %c0_i32_1 = arith.constant 0 : i32
    return %c0_i32, %c0_i32_0 : i32, i32
  }
  func.func @transform_3(%arg0: i32) -> (i32, i32) {
    %c0_i32 = arith.constant 0 : i32
    %c0_i32_0 = arith.constant 0 : i32
    %c0_i32_1 = arith.constant 0 : i32
    return %c0_i32, %c0_i32_0 : i32, i32
  }
  func.func @transform_4(%arg0: i32) -> (i32, i32) {
    %c0_i32 = arith.constant 0 : i32
    %c0_i32_0 = arith.constant 0 : i32
    %c0_i32_1 = arith.constant 0 : i32
    return %c0_i32, %c0_i32_0 : i32, i32
  }
  func.func @transform_5(%arg0: i32) -> (i32, i32) {
    %c0_i32 = arith.constant 0 : i32
    %c0_i32_0 = arith.constant 0 : i32
    %c0_i32_1 = arith.constant 0 : i32
    return %c0_i32, %c0_i32_0 : i32, i32
  }
  func.func @transform_6(%arg0: i32) -> (i32, i32) {
    %c0_i32 = arith.constant 0 : i32
    %c0_i32_0 = arith.constant 0 : i32
    %c0_i32_1 = arith.constant 0 : i32
    return %c0_i32, %c0_i32_0 : i32, i32
  }
  func.func @transform_7(%arg0: i32) -> (i32, i32) {
    %c0_i32 = arith.constant 0 : i32
    %c0_i32_0 = arith.constant 0 : i32
    return %arg0, %c0_i32 : i32, i32
  }
}

</mosaic_0001>

<bundles_post_ra>
// kernel: tpu_custom_call.1
= control target key start
LH: loop header
LB: loop body
LE: loop exit
PB: predicated region body
PF: predicated region fallthrough
CT: control target
= control target key end

     0   :  { %12 = vsyncpa [#allocation3], 0  ;;  %s345_s0 = inlined_call_operand.vmem [shape: f32[2,16], index: 0, kind: input, shape index: {}]   ;;  %s346_s1 = inlined_call_operand.hbm [shape: f32[16,40], index: 1, kind: input, shape index: {}]   ;;  %s347_s2 = inlined_call_operand.vmem [shape: f32[1,40], index: 2, kind: input, shape index: {}]   ;;  %s348_s3 = inlined_call_operand.vmem [shape: f32[40,40], index: 3, kind: input, shape index: {}]   ;;  %s349_s4 = inlined_call_operand.vmem [shape: f32[1,40], index: 4, kind: input, shape index: {}]   ;;  %s350_s5 = inlined_call_operand.vmem [shape: f32[40,8], index: 5, kind: input, shape index: {}]   ;;  %s351_s6 = inlined_call_operand.vmem [shape: f32[1,8], index: 6, kind: input, shape index: {}]   ;;  %s352_s7 = inlined_call_operand.hbm [shape: f32[2,8], index: 7, kind: output, shape index: {}]  }
   0x1   :  { %13 = vsyncpa [#allocation4], 0  ;;  %s20_s26 = sshll.u32 %s346_s1, 4  ;;  %s250_s27 = smov [#allocation2]   ;;  %s21_s26 = int_to_ptr.hbm [resolvable:$true] %s20_s26 }
   0x2   :  { %s22_s28 = sshll.u32 %s250_s27, 4  ;;  %s251_s29 = smov 128   ;;  %s23_s28 = int_to_ptr.vmem [resolvable:$true] %s22_s28 }
   0x3   :  { %s252_s30 = smov 8  }
   0x4   :  { %28 = dma.hbm_to_vmem [thread:$0]  %s21_s26, 256, %s23_s28, [#allocation3], %s251_s29, %s251_s29, %s252_s30  }
   0x5   :  { %246 = dma.done.wait [#allocation3], 256  }
   0x6   :  { %247 = vsyncadd [#allocation3], 4294967040  ;;  %v45_v0 = vld [vmem:[#allocation2 + $0x8] sm:$0xff]  ;;  %v44_v1 = vld [vmem:[#allocation2] sm:$0xff]  ;;  %vm50_vm0 = vcmask 130048   ;;  %vm84_vm1 = vcmask 326656  }
   0x7   :  { %v43_v2 = vld [vmem:[%s345_s0] sm:$0x3]  ;;  %68 = vmatpush.msra.mxu0 %v45_v0  ;;  %v78_v4 = vld [vmem:[%s348_s3 + $0x18] sm:$0xff]  ;;  %v77_v5 = vld [vmem:[%s348_s3 + $0x10] sm:$0xff]  ;;  %vm141_vm2 = vcmask 58368   ;;  %s174_s10 = sshll.u32 %s352_s7, 4  ;;  %s175_s10 = int_to_ptr.hbm [resolvable:$true] %s174_s10 }
   0x8   :  { %v79_v3 = vld [vmem:[%s348_s3 + $0x20] sm:$0xff]  ;;  %v76_v6 = vld [vmem:[%s348_s3 + $0x8] sm:$0xff]  ;;  %v112_v9 = vld [vmem:[%s350_s5 + $0x18] sm:$0xff] }
   0x9   :  { %99 = vmatpush.msra.mxu1 %v79_v3  ;;  %69 = vmatpush.msra.mxu0 %v44_v1  ;;  %v75_v7 = vld [vmem:[%s348_s3] sm:$0xff]  ;;  %v111_v14 = vld [vmem:[%s350_s5 + $0x10] sm:$0xff]  ;;  %v110_v15 = vld [vmem:[%s350_s5 + $0x8] sm:$0xff] }
   0xa   :  { %184 = vmatmul.msk.f32.vlgmr.msra.gmra.mxu0 %vm50_vm0, %v43_v2  ;;  %v113_v8 = vld [vmem:[%s350_s5 + $0x20] sm:$0xff] }
   0xb   :  { %100 = vmatpush.msra.mxu1 %v78_v4  ;;  %132 = vmatpush.msra.mxu2 %v113_v8  ;;  %v191_v10 = vld [vmem:[%s347_s2] ss:$0 sm:$0xff] }
   0xc   :  { %v109_v16 = vld [vmem:[%s350_s5] sm:$0xff] }
   0xd   :  { %101 = vmatpush.msra.mxu1 %v77_v5  ;;  %133 = vmatpush.msra.mxu2 %v112_v9  ;;  %v192_v17 = vld [vmem:[%s349_s4] ss:$0 sm:$0xff]  ;;  %s253_s4 = smov [#allocation5]  }
   0xe   :  { %v193_v21 = vld [vmem:[%s351_s6] ss:$0 sm:$0xff]  ;;  %s172_s5 = sshll.u32 %s253_s4, 4  ;;  %s173_s5 = int_to_ptr.vmem [resolvable:$true] %s172_s5 }
   0xf   :  { %102 = vmatpush.msra.mxu1 %v76_v6  ;;  %134 = vmatpush.msra.mxu2 %v111_v14 }
  0x11   :  { %103 = vmatpush.msra.mxu1 %v75_v7  ;;  %135 = vmatpush.msra.mxu2 %v110_v15 }
  0x13   :  { %136 = vmatpush.msra.mxu2 %v109_v16 }
  0x87   :  { %v71_v11 = vpop.f32.mrf.mxu0 }
  0x88   :  { %v72_v12 = vadd.f32 %v191_v10, %v71_v11 }
  0x8a   :  { %v74_v13 = vmax.f32 %v72_v12, 0.0 }
  0x8c   :  { %185 = vmatmul.msk.f32.vlgmr.msra.gmra.mxu1 %vm84_vm1, %v74_v13 }
 0x109   :  { %v105_v18 = vpop.f32.mrf.mxu1 }
 0x10a   :  { %v106_v19 = vadd.f32 %v192_v17, %v105_v18 }
 0x10c   :  { %v108_v20 = vmax.f32 %v106_v19, 0.0 }
 0x10e   :  { %186 = vmatmul.msk.f32.vlgmr.msra.gmra.mxu2 %vm84_vm1, %v108_v20 }
 0x191   :  { %v138_v22 = vpop.f32.mrf.mxu2 }
 0x192   :  { %v139_v23 = vadd.f32 %v193_v21, %v138_v22 }
 0x194   :  { %v142_v24 = vsel %vm141_vm2, %v139_v23, -inf }
 0x195   :  { %143 = vmax.xlane.f32.xlu0 %v142_v24 }
 0x208   :  { %v144_v25 = vpop.xlane.xlu0 %143 }
 0x209   :  { %v145_v26 = vsub.f32 %v139_v23, %v144_v25 }
 0x20b   :  { %v146_v27 = vmul.f32 1.442695, %v145_v26 }
 0x20d   :  { %194 = vpow2.f32 %v146_v27 }
 0x213   :  { %v195_v28 = vpop.eup %194 }
 0x214   :  { %v148_v29 = vsel %vm141_vm2, %v195_v28, 0.0 }
 0x215   :  { %149 = vadd.xlane.f32.xlu0 %v148_v29 }
 0x288   :  { %v150_v30 = vpop.xlane.xlu0 %149 }
 0x289   :  { %196 = vrcp.f32 %v150_v30  ;;  %v162_v34 = vand.u32 2147483648, %v150_v30  ;;  %v160_v36 = vand.u32 2147483647, %v150_v30  ;;  %vm156_vm4 = vweird.f32 %v150_v30 }
 0x28b   :  { %v163_v38 = vor.u32 1.1754944e-38, %v162_v34  ;;  %vm161_vm6 = vcmp.eq.f32.partialorder %v160_v36, 8.507059e+37 }
 0x28f   :  { %v197_v31 = vpop.eup %196 }
 0x290   :  { %v152_v32 = vmul.f32 %v197_v31, %v150_v30  ;;  %vm157_vm3 = vweird.f32 %v197_v31 }
 0x291   :  { %vm158_vm5 = vmor %vm156_vm4, %vm157_vm3 }
 0x292   :  { %v153_v33 = vsub.f32 1.0, %v152_v32 }
 0x294   :  { %v154_v35 = vmul.f32 %v197_v31, %v153_v33 }
 0x296   :  { %v155_v37 = vadd.f32 %v197_v31, %v154_v35 }
 0x298   :  { %v159_v39 = vsel %vm158_vm5, %v197_v31, %v155_v37 }
 0x299   :  { %v164_v40 = vsel %vm161_vm6, %v163_v38, %v159_v39 }
 0x29a   :  { %v165_v41 = vmul.f32 %v195_v28, %v164_v40 }
 0x29c   :  { %166 = vst.msk [vmem:[#allocation5] sm:$0x3] %vm141_vm2, %v165_v41 }
 0x29d   :  { %177 = dma.vmem_to_hbm [thread:$0]  %s173_s5, 32, %s175_s10, [#allocation4]  }
 0x29e   :  { %248 = dma.done.wait [#allocation4], 32  }
 0x29f   :  { %249 = vsyncadd [#allocation4], 4294967264 }
 0x2a0   :  { %182 = vsyncpa [#allocation3], 1 }
 0x2a1   :  { %183 = vsyncpa [#allocation4], 1 }

</bundles_post_ra>
